<compile_context>
chip_gen: v7x
topology: tpu7x:2x2x1
jax: 0.10.0
libtpu: 0.0.40
codegen_flags: <defaults>
</compile_context>

<pallas_src>
import jax
import jax.numpy as jnp
from jax.experimental import pallas as pl
from jax.experimental.pallas import tpu as pltpu  # noqa: F401  (TPU backend)


def se_block_kernel(s_ref, w1_ref, b1_ref, w2_ref, b2_ref, x_ref, w3_ref, o_ref):
    # ---- Squeeze path: VPU multiplies + XLU reductions (no MXU round trips) ----
    s = s_ref[...]                                                    # [1, 72]
    # conv2d11: h[j] = sum_k w1[j,k] * s[k] + b1[j]   (w1 in PyTorch [out,in])
    h = jnp.sum(w1_ref[...] * s, axis=1, keepdims=True) + b1_ref[...]  # [24, 1]
    h = jnp.maximum(h, 0.0)                                             # ReLU
    # conv2d12: g[j] = sum_k w2[k,j] * h[k] + b2[j]   (w2 stored [in,out])
    g = jnp.sum(w2_ref[...] * h, axis=0, keepdims=True) + b2_ref[...]   # [1, 72]
    # Hardsigmoid: relu6(x + 3) / 6 == clip(x * 1/6 + 0.5, 0, 1)  (mul, not div)
    g = jnp.clip(g * (1.0 / 6.0) + 0.5, 0.0, 1.0)                       # [1, 72]

    # ---- Excite + final 1x1 conv, fused ----
    # (g * x) @ w3 == (w3 * g) @ x in [C, HW] form: fold the gate into the
    # small 40x72 weight instead of scaling the 72x784 activation.
    w3_scaled = (w3_ref[...] * g).astype(jnp.bfloat16)                  # [40, 72]
    x = x_ref[...]
    if x.dtype != jnp.bfloat16:                                         # static branch
        x = x.astype(jnp.bfloat16)
    acc = jnp.dot(w3_scaled, x, preferred_element_type=jnp.float32)     # [40, 784]
    o_ref[...] = acc.astype(o_ref.dtype)


def se_block(s_vec, w1, b1, w2, b2, x_chw, w3, *, out_dtype=jnp.float32):
    c_in, hw = x_chw.shape
    c_out = w3.shape[0]
    x_bytes = x_chw.size * jnp.dtype(x_chw.dtype).itemsize
    out_bytes = c_out * hw * jnp.dtype(out_dtype).itemsize
    small_bytes = (s_vec.size + w1.size + b1.size + w2.size + b2.size + w3.size) * 4
    cost = pl.CostEstimate(
        flops=2 * c_out * c_in * hw + 2 * (w1.size + w2.size),
        transcendentals=0,
        bytes_accessed=x_bytes + out_bytes + small_bytes,
    )
    return pl.pallas_call(
        se_block_kernel,
        out_shape=jax.ShapeDtypeStruct((c_out, hw), out_dtype),
        in_specs=[
            pl.BlockSpec(s_vec.shape, lambda: (0, 0)),
            pl.BlockSpec(w1.shape, lambda: (0, 0)),
            pl.BlockSpec(b1.shape, lambda: (0, 0)),
            pl.BlockSpec(w2.shape, lambda: (0, 0)),
            pl.BlockSpec(b2.shape, lambda: (0, 0)),
            pl.BlockSpec(x_chw.shape, lambda: (0, 0)),
            pl.BlockSpec(w3.shape, lambda: (0, 0)),
        ],
        out_specs=pl.BlockSpec((c_out, hw), lambda: (0, 0)),
        cost_estimate=cost,
    )(s_vec, w1, b1, w2, b2, x_chw, w3)


def forward(x35_nchw, x34_nchw, params, *, out_dtype=jnp.float32):
    """Mirrors M.forward(x35, x34) with NCHW tensors.

    x34 may be f32 (module-exact path, cast to bf16 inside the kernel) or bf16
    (pass it through when the upstream producer already emits bf16 — halves the
    dominant HBM read).  out_dtype=bf16 likewise halves the writeback when the
    downstream consumer tolerates it.
    """
    n, c, h, w = x34_nchw.shape
    assert n == 1
    s = x35_nchw.reshape(1, c)            # [1,72,1,1] -> [1,72]   (free)
    x_chw = x34_nchw.reshape(c, h * w)    # [1,72,28,28] -> [72,784] (free)
    out_mat = se_block(s, params["w1"], params["b1"],
                       params["w2"], params["b2"], x_chw, params["w3"],
                       out_dtype=out_dtype)
    c_out = params["w3"].shape[0]
    return out_mat.reshape(1, c_out, h, w)  # [40,784] -> [1,40,28,28] (free)


def init_params(key):
    k1, k2, k3, k4, k5 = jax.random.split(key, 5)
    # Conv2d(72, 24, 1x1): PyTorch weight [24, 72, 1, 1] -> stored native [24, 72]
    w1 = jax.random.normal(k1, (24, 72), jnp.float32) * 0.05
    b1 = jax.random.normal(k2, (24, 1), jnp.float32) * 0.05   # column for [24,1] h
    # Conv2d(24, 72, 1x1): PyTorch weight [72, 24, 1, 1] -> stored transposed [24, 72]
    w2 = jax.random.normal(k3, (24, 72), jnp.float32) * 0.05
    b2 = jax.random.normal(k4, (1, 72), jnp.float32) * 0.05
    # Conv2d(72, 40, 1x1, bias=False): PyTorch weight [40, 72, 1, 1] -> native [40, 72]
    w3 = jax.random.normal(k5, (40, 72), jnp.float32) * 0.05
    return {"w1": w1, "b1": b1, "w2": w2, "b2": b2, "w3": w3}


if __name__ == "__main__":
    key = jax.random.PRNGKey(0)
    kx34, kx35, kp = jax.random.split(key, 3)

    x34 = jax.random.normal(kx34, (1, 72, 28, 28), jnp.float32)
    x35 = jax.random.normal(kx35, (1, 72, 1, 1), jnp.float32)
    params = init_params(kp)

    # Module-exact (f32 in / f32 out) path.
    out = forward(x35, x34, params)
    jax.block_until_ready(out)
    assert out.shape == (1, 40, 28, 28), out.shape
    assert out.dtype == jnp.float32

    # ---- Reference checks (pure JAX, no Pallas) ----
    s = x35.reshape(1, 72)
    h_ref = jnp.maximum(s @ params["w1"].T + params["b1"].T, 0.0)          # [1, 24]
    g_ref = jnp.clip((h_ref @ params["w2"] + params["b2"]) / 6.0 + 0.5, 0.0, 1.0)
    x_mat = x34.reshape(72, 28 * 28)

    # (a) bf16-matched reference (same math as the kernel) -- tight tolerance.
    w3s = (params["w3"] * g_ref).astype(jnp.bfloat16)
    ref_bf16 = jnp.dot(w3s, x_mat.astype(jnp.bfloat16),
                       preferred_element_type=jnp.float32).reshape(1, 40, 28, 28)
    assert jnp.allclose(out, ref_bf16, atol=1e-3, rtol=1e-3)

    # (b) full-f32 reference (original module semantics) -- loose tolerance
    #     accounting for the intentional bf16 cast at the main matmul.
    ref_f32 = jnp.dot(params["w3"] * g_ref, x_mat).reshape(1, 40, 28, 28)
    assert jnp.allclose(out, ref_f32, atol=3e-2, rtol=3e-2)

    # (c) reduced-HBM path (bf16 feature map in, bf16 out) also compiles/runs.
    #     (Cast here is only for the demo; in a real graph the producer emits bf16.)
    out_bf = forward(x35, x34.astype(jnp.bfloat16), params, out_dtype=jnp.bfloat16)
    jax.block_until_ready(out_bf)
    assert out_bf.shape == (1, 40, 28, 28) and out_bf.dtype == jnp.bfloat16
    assert jnp.allclose(out_bf.astype(jnp.float32), ref_f32, atol=5e-2, rtol=5e-2)

    print("KERNEL_OK")
</pallas_src>

<mosaic_0001>
module attributes {stable_mosaic.version = 11 : i64} {
  func.func @se_block_kernel(%arg0: memref<1x72xf32, #tpu.memory_space<vmem>>, %arg1: memref<24x72xf32, #tpu.memory_space<vmem>>, %arg2: memref<24x1xf32, #tpu.memory_space<vmem>>, %arg3: memref<24x72xf32, #tpu.memory_space<vmem>>, %arg4: memref<1x72xf32, #tpu.memory_space<vmem>>, %arg5: memref<72x784xf32, #tpu.memory_space<vmem>>, %arg6: memref<40x72xf32, #tpu.memory_space<vmem>>, %arg7: memref<40x784xf32, #tpu.memory_space<vmem>>) attributes {dimension_semantics = [], scalar_prefetch = 0 : i64, scratch_operands = 0 : i64, tpu.core_type = #tpu.core_type<tc>} {
    %c0 = arith.constant 0 : index
    %c0_0 = arith.constant 0 : index
    %0 = vector.load %arg0[%c0, %c0_0] : memref<1x72xf32, #tpu.memory_space<vmem>>, vector<1x72xf32>
    %c0_1 = arith.constant 0 : index
    %c0_2 = arith.constant 0 : index
    %1 = vector.load %arg1[%c0_1, %c0_2] : memref<24x72xf32, #tpu.memory_space<vmem>>, vector<24x72xf32>
    %2 = vector.broadcast %0 : vector<1x72xf32> to vector<24x72xf32>
    %3 = arith.mulf %1, %2 : vector<24x72xf32>
    %cst = arith.constant dense<0.000000e+00> : vector<24xf32>
    %4 = vector.multi_reduction <add>, %3, %cst [1] : vector<24x72xf32> to vector<24xf32>
    %5 = vector.shape_cast %4 : vector<24xf32> to vector<24x1xf32>
    %c0_3 = arith.constant 0 : index
    %c0_4 = arith.constant 0 : index
    %6 = vector.load %arg2[%c0_3, %c0_4] : memref<24x1xf32, #tpu.memory_space<vmem>>, vector<24x1xf32>
    %7 = arith.addf %5, %6 : vector<24x1xf32>
    %cst_5 = arith.constant 0.000000e+00 : f32
    %8 = vector.broadcast %cst_5 : f32 to vector<24x1xf32>
    %9 = arith.maximumf %7, %8 : vector<24x1xf32>
    %c0_6 = arith.constant 0 : index
    %c0_7 = arith.constant 0 : index
    %10 = vector.load %arg3[%c0_6, %c0_7] : memref<24x72xf32, #tpu.memory_space<vmem>>, vector<24x72xf32>
    %11 = vector.broadcast %9 : vector<24x1xf32> to vector<24x72xf32>
    %12 = arith.mulf %10, %11 : vector<24x72xf32>
    %cst_8 = arith.constant dense<0.000000e+00> : vector<72xf32>
    %13 = vector.multi_reduction <add>, %12, %cst_8 [0] : vector<24x72xf32> to vector<72xf32>
    %14 = vector.shape_cast %13 : vector<72xf32> to vector<1x72xf32>
    %c0_9 = arith.constant 0 : index
    %c0_10 = arith.constant 0 : index
    %15 = vector.load %arg4[%c0_9, %c0_10] : memref<1x72xf32, #tpu.memory_space<vmem>>, vector<1x72xf32>
    %16 = arith.addf %14, %15 : vector<1x72xf32>
    %cst_11 = arith.constant 0.166666672 : f32
    %17 = vector.broadcast %cst_11 : f32 to vector<1x72xf32>
    %18 = arith.mulf %16, %17 : vector<1x72xf32>
    %cst_12 = arith.constant 5.000000e-01 : f32
    %19 = vector.broadcast %cst_12 : f32 to vector<1x72xf32>
    %20 = arith.addf %18, %19 : vector<1x72xf32>
    %cst_13 = arith.constant 0.000000e+00 : f32
    %cst_14 = arith.constant 1.000000e+00 : f32
    %21 = vector.broadcast %cst_13 : f32 to vector<1x72xf32>
    %22 = arith.maximumf %21, %20 : vector<1x72xf32>
    %23 = vector.broadcast %cst_14 : f32 to vector<1x72xf32>
    %24 = arith.minimumf %23, %22 : vector<1x72xf32>
    %c0_15 = arith.constant 0 : index
    %c0_16 = arith.constant 0 : index
    %25 = vector.load %arg6[%c0_15, %c0_16] : memref<40x72xf32, #tpu.memory_space<vmem>>, vector<40x72xf32>
    %26 = vector.broadcast %24 : vector<1x72xf32> to vector<40x72xf32>
    %27 = arith.mulf %25, %26 : vector<40x72xf32>
    %28 = arith.truncf %27 : vector<40x72xf32> to vector<40x72xbf16>
    %c0_17 = arith.constant 0 : index
    %c0_18 = arith.constant 0 : index
    %29 = vector.load %arg5[%c0_17, %c0_18] : memref<72x784xf32, #tpu.memory_space<vmem>>, vector<72x784xf32>
    %30 = arith.truncf %29 : vector<72x784xf32> to vector<72x784xbf16>
    %cst_19 = arith.constant dense<0.000000e+00> : vector<40x784xf32>
    %31 = tpu.matmul %28, %30, %cst_19 {dimension_numbers = #tpu.dot_dimension_numbers<[1], [0], [0], [1], [0, 0, 1, 1], [], []>} : vector<40x72xbf16>, vector<72x784xbf16>, vector<40x784xf32> -> vector<40x784xf32>
    %c0_20 = arith.constant 0 : index
    %c0_21 = arith.constant 0 : index
    %32 = vector.load %arg7[%c0_20, %c0_21] : memref<40x784xf32, #tpu.memory_space<vmem>>, vector<40x784xf32>
    tpu.vector_store %arg7[%c0_20, %c0_21], %31 {strides = array<i32>} : memref<40x784xf32, #tpu.memory_space<vmem>>, vector<40x784xf32>,
    return
  }
}

</mosaic_0001>

<bundles_post_ra>
// kernel: tpu_custom_call.1
= control target key start
LH: loop header
LB: loop body
LE: loop exit
PB: predicated region body
PF: predicated region fallthrough
CT: control target
= control target key end

     0   :  { %12 = vsyncpa [#allocation3], 0  ;;  %s935_s0 = inlined_call_operand.vmem [shape: f32[1,72], index: 0, kind: input, shape index: {}]   ;;  %s936_s1 = inlined_call_operand.hbm [shape: f32[24,72], index: 1, kind: input, shape index: {}]   ;;  %s937_s2 = inlined_call_operand.vmem [shape: f32[24,1], index: 2, kind: input, shape index: {}]   ;;  %s938_s3 = inlined_call_operand.hbm [shape: f32[24,72], index: 3, kind: input, shape index: {}]   ;;  %s939_s4 = inlined_call_operand.vmem [shape: f32[1,72], index: 4, kind: input, shape index: {}]   ;;  %s940_s5 = inlined_call_operand.hbm [shape: f32[72,784], index: 5, kind: input, shape index: {}]   ;;  %s941_s6 = inlined_call_operand.vmem [shape: f32[40,72], index: 6, kind: input, shape index: {}]   ;;  %s942_s7 = inlined_call_operand.hbm [shape: f32[40,784], index: 7, kind: output, shape index: {}]  }
   0x1   :  { %13 = vsyncpa [#allocation6], 0 }
   0x2   :  { %14 = vsyncpa [#allocation4], 0  ;;  %s731_s24 = smov [#allocation5]   ;;  %s732_s26 = smov [#allocation2]  }
   0x3   :  { %s36_s25 = sshll.u32 %s731_s24, 4  ;;  %s22_s27 = sshll.u32 %s732_s26, 4  ;;  %s37_s25 = int_to_ptr.vmem [resolvable:$true] %s36_s25  ;;  %s782_s27 = int_to_ptr.vmem [resolvable:$true] %s22_s27 }
   0x4   :  { %s637_s30 = scalar_lea.hbm %s938_s3, 384 }
   0x5   :  { %p638_p0 = scmp.ne.s32.totalorder %s938_s3, %s637_s30  ;;  %p641_p1 = scmp.lt.u32.totalorder %s637_s30, %s938_s3 }
   0x7   :  { %p643_p2 = pnand %p641_p1, %p638_p0 }
   0x9   :  { %646 = shalt.err (!%p643_p2)
}
   0xa   :  { %s647_s12 = scalar_lea.vmem %s37_s25, 384  ;;  %p652_p4 = scmp.lt.s32.totalorder %s37_s25, %s37_s25 }
   0xb   :  { %p648_p3 = scmp.ne.s32.totalorder %s37_s25, %s647_s12  ;;  %p653_p5 = scmp.lt.s32.totalorder %s647_s12, %s647_s12 }
   0xd   :  { %p654_p6 = por %p653_p5, %p652_p4 }
   0xf   :  { %p655_p7 = pnand %p654_p6, %p648_p3 }
  0x11   :  { %658 = shalt.err (!%p655_p7)
}
  0x12   :  { %s733_s13 = smov 128   ;;  %s734_s14 = smov 8  }
  0x13   :  { %42 = dma.hbm_to_vmem [thread:$0]  %s938_s3, 384, %s37_s25, [#allocation6], %s733_s13, %s733_s13, %s734_s14  }
  0x14   :  { %s659_s19 = scalar_lea.hbm %s936_s1, 384 }
  0x15   :  { %p660_p8 = scmp.ne.s32.totalorder %s936_s1, %s659_s19  ;;  %p663_p9 = scmp.lt.u32.totalorder %s659_s19, %s936_s1 }
  0x17   :  { %p665_p10 = pnand %p663_p9, %p660_p8 }
  0x19   :  { %668 = shalt.err (!%p665_p10)
}
  0x1a   :  { %s669_s24 = scalar_lea.vmem %s782_s27, 384  ;;  %p674_p12 = scmp.lt.s32.totalorder %s782_s27, %s782_s27 }
  0x1b   :  { %p670_p11 = scmp.ne.s32.totalorder %s782_s27, %s669_s24  ;;  %p675_p13 = scmp.lt.s32.totalorder %s669_s24, %s669_s24 }
  0x1d   :  { %p676_p0 = por %p675_p13, %p674_p12 }
  0x1f   :  { %p677_p1 = pnand %p676_p0, %p670_p11 }
  0x21   :  { %680 = shalt.err (!%p677_p1)
}
  0x22   :  { %28 = dma.hbm_to_vmem [thread:$0]  %s936_s1, 384, %s782_s27, [#allocation3], %s733_s13, %s733_s13, %s734_s14  }
  0x23   :  { %s735_s26 = smov [#allocation7]   ;;  %s681_s8 = scalar_lea.hbm %s940_s5, 8064 }
  0x24   :  { %s50_s28 = sshll.u32 %s735_s26, 4  ;;  %p682_p2 = scmp.ne.s32.totalorder %s940_s5, %s681_s8  ;;  %s51_s28 = int_to_ptr.vmem [resolvable:$true] %s50_s28 }
  0x25   :  { %p685_p3 = scmp.lt.u32.totalorder %s681_s8, %s940_s5 }
  0x27   :  { %p687_p4 = pnand %p685_p3, %p682_p2 }
  0x29   :  { %690 = shalt.err (!%p687_p4)
}
  0x2a   :  { %s691_s15 = scalar_lea.vmem %s51_s28, 8064  ;;  %p696_p6 = scmp.lt.s32.totalorder %s51_s28, %s51_s28 }
  0x2b   :  { %p692_p5 = scmp.ne.s32.totalorder %s51_s28, %s691_s15  ;;  %p697_p7 = scmp.lt.s32.totalorder %s691_s15, %s691_s15 }
  0x2d   :  { %p698_p8 = por %p697_p7, %p696_p6 }
  0x2f   :  { %p699_p9 = pnand %p698_p8, %p692_p5 }
  0x31   :  { %702 = shalt.err (!%p699_p9)
}
  0x32   :  { %s736_s1 = smov 896   ;;  %s737_s27 = smov 56  }
  0x33   :  { %56 = dma.hbm_to_vmem [thread:$0]  %s940_s5, 8064, %s51_s28, [#allocation6], %s736_s1, %s736_s1, %s737_s27  }
  0x34   :  { %725 = dma.done.wait [#allocation3], 384  }
  0x35   :  { %726 = vsyncadd [#allocation3], 4294966912 }
  0x36   :  { %727 = dma.done.wait [#allocation6], 8448  }
  0x37   :  { %728 = vsyncadd [#allocation6], 4294958848  ;;  %v578_v0 = vld [vmem:[%s935_s0] ss:$0 sm:$0xff]  ;;  %vm82_vm0 = vcmask 588800   ;;  %v72_v2 = vld [vmem:[#allocation2 + $0x10] sm:$0xff] }
  0x38   :  { %v70_v1 = vld [vmem:[#allocation2] sm:$0xff]  ;;  %v81_v4 = vmul.f32 %v578_v0, %v72_v2  ;;  %v71_v5 = vld [vmem:[#allocation2 + $0x8] sm:$0xff]  ;;  %v738_v10 = vmov 0   ;;  %v94_v12 = vld [vmem:[%s937_s2 + $0x10] sm:$0xff]  ;;  %vm263_vm1 = vcmask 1043456   ;;  %vm740_vm2 = vmmov 0  }
  0x39   :  { %v79_v3 = vmul.f32 %v578_v0, %v70_v1  ;;  %v80_v6 = vmul.f32 %v578_v0, %v71_v5  ;;  %635 = vset.pattern.permute.xlu1 %v738_v10  ;;  %636 = vset.pattern.permute.xlu0 %v738_v10  ;;  %v92_v11 = vld [vmem:[%s937_s2] sm:$0xff]  ;;  %v93_v17 = vld [vmem:[%s937_s2 + $0x8] sm:$0xff]  ;;  %v157_v23 = vld [vmem:[#allocation7 + $0x8] sm:$0xff]  ;;  %vm530_vm3 = vcmask 130048  }
  0x3a   :  { %v89_v8 = vsel %vm82_vm0, %v81_v4, 0.0  ;;  %317 = vmatprep.mubr.bf16.mxu0 %v738_v10  ;;  %378 = vmatprep.mubr.bf16.mxu1 %v738_v10  ;;  %v164_v24 = vld [vmem:[#allocation7 + $0x40] sm:$0xff]  ;;  %v159_v25 = vld [vmem:[#allocation7 + $0x18] sm:$0xff]  ;;  %v166_v27 = vld [vmem:[#allocation7 + $0x50] sm:$0xff] }
  0x3b   :  { %v83_v7 = vsel %vm82_vm0, %v79_v3, 0.0  ;;  %90 = vadd.xlane.f32.xlu1 %v89_v8  ;;  %v86_v9 = vsel %vm82_vm0, %v80_v6, 0.0  ;;  %v220_v26 = vpack.c.bf16 %v164_v24, %v157_v23  ;;  %v156_v28 = vld [vmem:[#allocation7] sm:$0xff]  ;;  %v163_v29 = vld [vmem:[#allocation7 + $0x38] sm:$0xff]  ;;  %v222_v30 = vpack.c.bf16 %v166_v27, %v159_v25  ;;  %v158_v32 = vld [vmem:[#allocation7 + $0x10] sm:$0xff] }
  0x3c   :  { %84 = vadd.xlane.f32.xlu0 %v83_v7  ;;  %v219_v31 = vpack.c.bf16 %v163_v29, %v156_v28  ;;  %v165_v33 = vld [vmem:[#allocation7 + $0x48] sm:$0xff]  ;;  %v171_v35 = vld [vmem:[#allocation7 + $0x78] sm:$0xff]  ;;  %v178_v36 = vld [vmem:[#allocation7 + $0xb0] sm:$0xff] }
  0x3d   :  { %285 = vmatprep.subr.bf16.mxu0 %v220_v26  ;;  %v221_v34 = vpack.c.bf16 %v165_v33, %v158_v32  ;;  %346 = vmatprep.subr.bf16.mxu1 %v222_v30  ;;  %v173_v37 = vld [vmem:[#allocation7 + $0x88] sm:$0xff]  ;;  %v227_v38 = vpack.c.bf16 %v178_v36, %v171_v35  ;;  %v180_v39 = vld [vmem:[#allocation7 + $0xc0] sm:$0xff]  ;;  %v170_v40 = vld [vmem:[#allocation7 + $0x70] sm:$0xff] }
  0x3e   :  { %286 = vmatpush1.bf16.msra.mxu0 %v219_v31  ;;  %v177_v41 = vld [vmem:[#allocation7 + $0xa8] sm:$0xff]  ;;  %v229_v42 = vpack.c.bf16 %v180_v39, %v173_v37  ;;  %v172_v44 = vld [vmem:[#allocation7 + $0x80] sm:$0xff]  ;;  %v179_v45 = vld [vmem:[#allocation7 + $0xb8] sm:$0xff] }
  0x3f   :  { %347 = vmatpush1.bf16.msra.mxu1 %v221_v34  ;;  %v226_v43 = vpack.c.bf16 %v177_v41, %v170_v40  ;;  %287 = vmatprep.subr.bf16.mxu0 %v227_v38  ;;  %v228_v46 = vpack.c.bf16 %v179_v45, %v172_v44  ;;  %v185_v47 = vld [vmem:[#allocation7 + $0xe8] sm:$0xff]  ;;  %v192_v48 = vld [vmem:[#allocation7 + $0x120] sm:$0xff]  ;;  %v187_v49 = vld [vmem:[#allocation7 + $0xf8] sm:$0xff] }
  0x40   :  { %87 = vadd.xlane.f32.xlu0 %v86_v9  ;;  %348 = vmatprep.subr.bf16.mxu1 %v229_v42  ;;  %v234_v50 = vpack.c.bf16 %v192_v48, %v185_v47  ;;  %v194_v51 = vld [vmem:[#allocation7 + $0x130] sm:$0xff]  ;;  %v184_v52 = vld [vmem:[#allocation7 + $0xe0] sm:$0xff]  ;;  %v191_v53 = vld [vmem:[#allocation7 + $0x118] sm:$0xff]  ;;  %v144_v42 = vlaneseq }
  0x41   :  { %v236_v54 = vpack.c.bf16 %v194_v51, %v187_v49  ;;  %v233_v55 = vpack.c.bf16 %v191_v53, %v184_v52  ;;  %v186_v56 = vld [vmem:[#allocation7 + $0xf0] sm:$0xff]  ;;  %v193_v57 = vld [vmem:[#allocation7 + $0x128] sm:$0xff]  ;;  %v199_v59 = vld [vmem:[#allocation7 + $0x158] sm:$0xff] }
  0x42   :  { %288 = vmatpush1.bf16.msra.mxu0 %v226_v43  ;;  %v235_v58 = vpack.c.bf16 %v193_v57, %v186_v56  ;;  %v206_v60 = vld [vmem:[#allocation7 + $0x190] sm:$0xff]  ;;  %v201_v61 = vld [vmem:[#allocation7 + $0x168] sm:$0xff]  ;;  %v208_v63 = vld [vmem:[#allocation7 + $0x1a0] sm:$0xff]  ;;  %v145_v45 = vshrl.u32 %v144_v42, 7 }
  0x43   :  { %349 = vmatpush1.bf16.msra.mxu1 %v228_v46  ;;  %289 = vmatprep.subr.bf16.mxu0 %v234_v50  ;;  %v241_v62 = vpack.c.bf16 %v206_v60, %v199_v59  ;;  %v198_v0 = vld [vmem:[#allocation7 + $0x150] sm:$0xff]  ;;  %v205_v1 = vld [vmem:[#allocation7 + $0x188] sm:$0xff]  ;;  %v243_v2 = vpack.c.bf16 %v208_v63, %v201_v61  ;;  %v200_v4 = vld [vmem:[#allocation7 + $0x160] sm:$0xff] }
  0x44   :  { %350 = vmatprep.subr.bf16.mxu1 %v236_v54  ;;  %v240_v3 = vpack.c.bf16 %v205_v1, %v198_v0  ;;  %v207_v5 = vld [vmem:[#allocation7 + $0x198] sm:$0xff]  ;;  %v213_v7 = vld [vmem:[#allocation7 + $0x1c8] sm:$0xff]  ;;  %v212_v9 = vld [vmem:[#allocation7 + $0x1c0] sm:$0xff]  ;;  %v146_v48 = vsub.s32 0, %v145_v45 }
  0x45   :  { %v242_v6 = vpack.c.bf16 %v207_v5, %v200_v4  ;;  %v215_v8 = vld [vmem:[#allocation7 + $0x1d8] sm:$0xff]  ;;  %v102_v25 = vld [vmem:[#allocation5 + $0x8] sm:$0xff]  ;;  %v160_v53 = vld [vmem:[#allocation7 + $0x20] sm:$0xff] }
  0x46   :  { %290 = vmatpush1.bf16.msra.mxu0 %v233_v55  ;;  %v103_v24 = vld [vmem:[#allocation5 + $0x10] sm:$0xff]  ;;  %v133_v41 = vld [vmem:[%s939_s4] sm:$0x1]  ;;  %v169_v57 = vld [vmem:[#allocation7 + $0x68] sm:$0xff] }
  0x47   :  { %351 = vmatpush1.bf16.msra.mxu1 %v235_v58  ;;  %291 = vmatprep.subr.bf16.mxu0 %v241_v62  ;;  %v139_v51 = vld [vmem:[%s941_s6] sm:$0xff]  ;;  %v140_v52 = vld [vmem:[%s941_s6 + $0x8] sm:$0xff]  ;;  %v141_v1 = vld [vmem:[%s941_s6 + $0x10] sm:$0xff] }
  0x48   :  { %352 = vmatprep.subr.bf16.mxu1 %v243_v2  ;;  %v167_v55 = vld [vmem:[#allocation7 + $0x58] sm:$0xff]  ;;  %v162_v56 = vld [vmem:[#allocation7 + $0x30] sm:$0xff]  ;;  %v181_v4 = vld [vmem:[#allocation7 + $0xc8] sm:$0xff] }
  0x49   :  { %v175_v58 = vld [vmem:[#allocation7 + $0x98] sm:$0xff]  ;;  %v182_v59 = vld [vmem:[#allocation7 + $0xd0] sm:$0xff]  ;;  %v223_v62 = vpack.c.bf16 %v167_v55, %v160_v53  ;;  %v225_v63 = vpack.c.bf16 %v169_v57, %v162_v56  ;;  %v176_v5 = vld [vmem:[#allocation7 + $0xa0] sm:$0xff] }
  0x4a   :  { %292 = vmatpush1.bf16.msra.mxu0 %v240_v3  ;;  %v174_v0 = vld [vmem:[#allocation7 + $0x90] sm:$0xff]  ;;  %v231_v3 = vpack.c.bf16 %v182_v59, %v175_v58 }
  0x4b   :  { %353 = vmatpush1.bf16.msra.mxu1 %v242_v6  ;;  %v183_v6 = vld [vmem:[#allocation7 + $0xd8] sm:$0xff] }
  0xc8   :  { %v91_v14 = vpop.xlane.xlu1 %90 }
  0xc9   :  { %v85_v13 = vpop.xlane.xlu0 %84  ;;  %v97_v16 = vadd.f32 %v94_v12, %v91_v14  ;;  %v250_v12 = vpack.c.bf16 %v215_v8, %v215_v8  ;;  %v214_v14 = vld [vmem:[#allocation7 + $0x1d0] sm:$0xff]  ;;  %v189_v8 = vld [vmem:[#allocation7 + $0x108] sm:$0xff] }
  0xca   :  { %v95_v15 = vadd.f32 %v92_v11, %v85_v13  ;;  %v248_v11 = vpack.c.bf16 %v213_v7, %v213_v7  ;;  %v247_v13 = vpack.c.bf16 %v212_v9, %v212_v9  ;;  %v142_v7 = vld [vmem:[%s941_s6 + $0x18] sm:$0xff]  ;;  %v196_v9 = vld [vmem:[#allocation7 + $0x140] sm:$0xff] }
  0xcb   :  { %v100_v20 = vmax.f32 %v97_v16, 0.0  ;;  %v168_v16 = vld [vmem:[#allocation7 + $0x60] sm:$0xff]  ;;  %583 = vmatprep.subr.msk.bf16.mxu1 %vm263_vm1, %v250_v12  ;;  %v232_v12 = vpack.c.bf16 %v183_v6, %v176_v5 }
  0xcc   :  { %v98_v18 = vmax.f32 %v95_v15, 0.0  ;;  %v161_v15 = vld [vmem:[#allocation7 + $0x28] sm:$0xff]  ;;  %579 = vmatprep.subr.msk.bf16.mxu0 %vm263_vm1, %v248_v11  ;;  %v230_v11 = vpack.c.bf16 %v181_v4, %v174_v0 }
  0xcd   :  { %v88_v19 = vpop.xlane.xlu0 %87 }
  0xce   :  { %v96_v21 = vadd.f32 %v93_v17, %v88_v19  ;;  %106 = vperm.xlu1 %635, %v98_v18   ;;  %v249_v17 = vpack.c.bf16 %v214_v14, %v214_v14  ;;  %v224_v18 = vpack.c.bf16 %v168_v16, %v161_v15  ;;  %v265_v19 = vsel %vm263_vm1, %v247_v13, 0  ;;  %v188_v13 = vld [vmem:[#allocation7 + $0x100] sm:$0xff] }
  0xcf   :  { %294 = vmatpush1.bf16.msra.mxu0 %v265_v19  ;;  %v238_v16 = vpack.c.bf16 %v196_v9, %v189_v8  ;;  %v197_v19 = vld [vmem:[#allocation7 + $0x148] sm:$0xff] }
  0xd0   :  { %v99_v22 = vmax.f32 %v96_v21, 0.0  ;;  %407 = vmatprep.subr.bf16.mxu0 %v224_v18  ;;  %v739_v21 = vmov 0.0   ;;  %v190_v18 = vld [vmem:[#allocation7 + $0x110] sm:$0xff] }
  0xd2   :  { %116 = vperm.xlu1 %635, %v100_v20   ;;  %111 = vperm.xlu0 %636, %v99_v22   ;;  %v271_v20 = vsel %vm263_vm1, %v249_v17, 0  ;;  %v101_v22 = vld [vmem:[#allocation5] sm:$0xff]  ;;  %v195_v17 = vld [vmem:[#allocation7 + $0x138] sm:$0xff] }
  0xd3   :  { %355 = vmatpush1.bf16.msra.mxu1 %v271_v20  ;;  %v203_v20 = vld [vmem:[#allocation7 + $0x178] sm:$0xff] }
  0xd4   :  { %602 = vmatprep.subr.bf16.mxu1 %v739_v21 }
 0x14d   :  { %v107_v23 = vpop.permute.xlu1 %106 }
 0x14e   :  { %v119_v26 = vmul.f32 %v107_v23, %v101_v22  ;;  %v210_v22 = vld [vmem:[#allocation7 + $0x1b0] sm:$0xff]  ;;  %v237_v23 = vpack.c.bf16 %v195_v17, %v188_v13 }
 0x150   :  { %v122_v31 = vsel %vm82_vm0, %v119_v26, 0.0  ;;  %v209_v26 = vld [vmem:[#allocation7 + $0x1a8] sm:$0xff] }
 0x151   :  { %v117_v27 = vpop.permute.xlu1 %116  ;;  %v112_v28 = vpop.permute.xlu0 %111 }
 0x152   :  { %v121_v29 = vmul.f32 %v117_v27, %v103_v24  ;;  %v120_v30 = vmul.f32 %v112_v28, %v102_v25  ;;  %v239_v24 = vpack.c.bf16 %v197_v19, %v190_v18  ;;  %v202_v25 = vld [vmem:[#allocation7 + $0x170] sm:$0xff]  ;;  %v245_v28 = vpack.c.bf16 %v210_v22, %v203_v20 }
 0x154   :  { %v123_v32 = vsel %vm82_vm0, %v120_v30, 0.0  ;;  %v125_v34 = vsel %vm82_vm0, %v121_v29, 0.0  ;;  %v204_v29 = vld [vmem:[#allocation7 + $0x180] sm:$0xff]  ;;  %v211_v30 = vld [vmem:[#allocation7 + $0x1b8] sm:$0xff] }
 0x155   :  { %v124_v33 = vadd.f32 %v123_v32, %v122_v31  ;;  %v217_v31 = vld [vmem:[#allocation7 + $0x1e8] sm:$0xff]  ;;  %v143_v32 = vld [vmem:[%s941_s6 + $0x20] sm:$0xff]  ;;  %s741_s6 = smov [#allocation8]  }
 0x156   :  { %s565_s9 = sshll.u32 %s741_s6, 4  ;;  %s566_s9 = int_to_ptr.vmem [resolvable:$true] %s565_s9 }
 0x157   :  { %v126_v35 = vadd.f32 %v125_v34, %v124_v33  ;;  %v216_v33 = vld [vmem:[#allocation7 + $0x1e0] sm:$0xff]  ;;  %v218_v34 = vld [vmem:[#allocation7 + $0x1f0] sm:$0xff]  ;;  %s703_s10 = scalar_lea.vmem %s566_s9, 4480  ;;  %p708_p11 = scmp.lt.s32.totalorder %s566_s9, %s566_s9 }
 0x158   :  { %p704_p10 = scmp.ne.s32.totalorder %s566_s9, %s703_s10  ;;  %p709_p12 = scmp.lt.s32.totalorder %s703_s10, %s703_s10 }
 0x159   :  { %v127_v36 = vrot.slane %v126_v35, 4 }
 0x15a   :  { %p710_p13 = por %p709_p12, %p708_p11 }
 0x15b   :  { %v128_v37 = vadd.f32 %v127_v36, %v126_v35  ;;  %v244_v35 = vpack.c.bf16 %v209_v26, %v202_v25  ;;  %v246_v36 = vpack.c.bf16 %v211_v30, %v204_v29 }
 0x15c   :  { %p711_p0 = pnand %p710_p13, %p704_p10 }
 0x15d   :  { %v129_v38 = vrot.slane %v128_v37, 2 }
 0x15f   :  { %v130_v39 = vadd.f32 %v129_v38, %v128_v37  ;;  %v252_v37 = vpack.c.bf16 %v217_v31, %v217_v31 }
 0x161   :  { %v131_v40 = vrot.slane %v130_v39, 1 }
 0x163   :  { %v132_v43 = vadd.f32 %v131_v40, %v130_v39  ;;  %v251_v39 = vpack.c.bf16 %v216_v33, %v216_v33  ;;  %v253_v40 = vpack.c.bf16 %v218_v34, %v218_v34 }
 0x165   :  { %v134_v44 = vadd.f32 %v133_v41, %v132_v43  ;;  %v277_v42 = vsel %vm263_vm1, %v251_v39, 0  ;;  %v283_v43 = vsel %vm263_vm1, %v253_v40, 0 }
 0x167   :  { %v135_v46 = vmul.f32 0.16666667, %v134_v44 }
 0x169   :  { %v136_v47 = vadd.f32 0.5, %v135_v46 }
 0x16b   :  { %v137_v49 = vmax.f32 %v136_v47, 0.0 }
 0x16d   :  { %v138_v50 = vmin.f32 %v137_v49, 1.0 }
 0x16f   :  { %v864_v54 = vrot.slane %v138_v50, %v146_v48 }
 0x171   :  { %v148_v60 = vmul.f32 %v864_v54, %v139_v51  ;;  %v149_v61 = vmul.f32 %v864_v54, %v140_v52  ;;  %v150_v14 = vmul.f32 %v864_v54, %v141_v1  ;;  %v151_v15 = vmul.f32 %v864_v54, %v142_v7 }
 0x172   :  { %v152_v38 = vmul.f32 %v864_v54, %v143_v32 }
 0x173   :  { %v871_v2 = vpack.c.bf16 %v149_v61, %v148_v60  ;;  %v154_v27 = vpack.c.bf16 %v151_v15, %v150_v14 }
 0x174   :  { %v155_v41 = vpack.c.bf16 %v152_v38, %v152_v38 }
 0x175   :  { %580 = vmatmul.mubr.msk.bf16.vlgmr.msra.gmra.mrb[0].mxu0 %vm82_vm0, %v871_v2  ;;  %584 = vmatmul.mubr.msk.bf16.vlgmr.msra.gmra.mrb[0].mxu1 %vm82_vm0, %v871_v2 }
 0x176   :  { %408 = vmatpush1.bf16.msra.mxu0 %v223_v62  ;;  %603 = vmatpush3.bf16.msra.mxu1 %v225_v63 }
 0x177   :  { %409 = vmatprep.subr.bf16.mxu0 %v231_v3  ;;  %604 = vmatprep.subr.bf16.mxu1 %v739_v21 }
 0x178   :  { %327 = vmatprep.mubr.bf16.mxu0 %v738_v10  ;;  %388 = vmatprep.mubr.bf16.mxu1 %v738_v10 }
 0x17a   :  { %410 = vmatpush1.bf16.msra.mxu0 %v230_v11  ;;  %605 = vmatpush3.bf16.msra.mxu1 %v232_v12 }
 0x17b   :  { %411 = vmatprep.subr.bf16.mxu0 %v238_v16  ;;  %606 = vmatprep.subr.bf16.mxu1 %v739_v21 }
 0x17d   :  { %581 = vmatmul.mubr.msk.bf16.gmra.mrb[4].mxu0 %vm82_vm0, %v154_v27  ;;  %585 = vmatmul.mubr.msk.bf16.gmra.mrb[4].mxu1 %vm82_vm0, %v154_v27 }
 0x17e   :  { %412 = vmatpush1.bf16.msra.mxu0 %v237_v23  ;;  %607 = vmatpush3.bf16.msra.mxu1 %v239_v24 }
 0x17f   :  { %413 = vmatprep.subr.bf16.mxu0 %v245_v28  ;;  %608 = vmatprep.subr.bf16.mxu1 %v739_v21 }
 0x180   :  { %337 = vmatprep.mubr.bf16.mxu0 %v738_v10  ;;  %398 = vmatprep.mubr.bf16.mxu1 %v738_v10 }
 0x182   :  { %414 = vmatpush1.bf16.msra.mxu0 %v244_v35  ;;  %609 = vmatpush3.bf16.msra.mxu1 %v246_v36 }
 0x183   :  { %587 = vmatprep.subr.msk.bf16.mxu0 %vm263_vm1, %v252_v37  ;;  %610 = vmatprep.subr.bf16.mxu1 %v739_v21 }
 0x185   :  { %582 = vmatmul.mubr.msk.bf16.gmra.mrb[8].mxu0 %vm82_vm0, %v155_v41  ;;  %586 = vmatmul.mubr.msk.bf16.gmra.mrb[8].mxu1 %vm82_vm0, %v155_v41 }
 0x186   :  { %416 = vmatpush1.bf16.msra.mxu0 %v277_v42  ;;  %611 = vmatpush3.bf16.msra.mxu1 %v283_v43 }
 0x187   :  { %439 = vmatprep.mubr.bf16.mxu0 %v738_v10  ;;  %612 = vmatprep.mubr.msk.bf16.mxu1 %vm740_vm2, %v739_v21 }
 0x18d   :  { %588 = vmatmul.mubr.msk.bf16.vlgmr.msra.gmra.mrb[12].mxu0 %vm82_vm0, %v871_v2  ;;  %613 = vmatmul.mubr.msk.bf16.vlgmr.msra.gmra.mrb[12].mxu1 %vm82_vm0, %v871_v2 }
 0x18e   :  { %449 = vmatprep.mubr.bf16.mxu0 %v738_v10  ;;  %616 = vmatprep.mubr.msk.bf16.mxu1 %vm740_vm2, %v739_v21 }
 0x195   :  { %589 = vmatmul.mubr.msk.bf16.gmra.mrb[16].mxu0 %vm82_vm0, %v154_v27  ;;  %617 = vmatmul.mubr.msk.bf16.gmra.mrb[16].mxu1 %vm82_vm0, %v154_v27 }
 0x196   :  { %459 = vmatprep.mubr.bf16.mxu0 %v738_v10  ;;  %620 = vmatprep.mubr.msk.bf16.mxu1 %vm740_vm2, %v739_v21 }
 0x19d   :  { %590 = vmatmul.mubr.msk.bf16.gmra.mrb[20].mxu0 %vm82_vm0, %v155_v41  ;;  %621 = vmatmul.mubr.msk.bf16.gmra.mrb[20].mxu1 %vm82_vm0, %v155_v41 }
 0x248   :  { %v319_v44 = vpop.f32.mrb[0].mxu0  ;;  %v380_v45 = vpop.f32.mrb[0].mxu1 }
 0x249   :  { %524 = vst [vmem:[#allocation8] sm:$0xff] %v319_v44  ;;  %526 = vst [vmem:[#allocation8 + $0x10] sm:$0xff] %v380_v45  ;;  %v321_v46 = vpop.f32.mrb[1].mxu0  ;;  %v382_v47 = vpop.f32.mrb[1].mxu1 }
 0x24a   :  { %525 = vst [vmem:[#allocation8 + $0x8] sm:$0xff] %v321_v46  ;;  %527 = vst [vmem:[#allocation8 + $0x18] sm:$0xff] %v382_v47  ;;  %v323_v48 = vpop.f32.mrb[2].mxu0  ;;  %v384_v49 = vpop.f32.mrb[2].mxu1 }
 0x24b   :  { %532 = vst [vmem:[#allocation8 + $0x38] sm:$0xff] %v323_v48  ;;  %534 = vst [vmem:[#allocation8 + $0x48] sm:$0xff] %v384_v49  ;;  %v325_v50 = vpop.f32.mrb[3].mxu0  ;;  %v386_v10 = vpop.f32.mrb[3].mxu1 }
 0x24c   :  { %533 = vst [vmem:[#allocation8 + $0x40] sm:$0xff] %v325_v50  ;;  %535 = vst [vmem:[#allocation8 + $0x50] sm:$0xff] %v386_v10 }
 0x250   :  { %v329_v21 = vpop.f32.mrb[4].mxu0  ;;  %v390_v51 = vpop.f32.mrb[4].mxu1 }
 0x251   :  { %539 = vst [vmem:[#allocation8 + $0x70] sm:$0xff] %v329_v21  ;;  %541 = vst [vmem:[#allocation8 + $0x80] sm:$0xff] %v390_v51  ;;  %v331_v52 = vpop.f32.mrb[5].mxu0  ;;  %v392_v53 = vpop.f32.mrb[5].mxu1 }
 0x252   :  { %540 = vst [vmem:[#allocation8 + $0x78] sm:$0xff] %v331_v52  ;;  %542 = vst [vmem:[#allocation8 + $0x88] sm:$0xff] %v392_v53  ;;  %v333_v54 = vpop.f32.mrb[6].mxu0  ;;  %v394_v55 = vpop.f32.mrb[6].mxu1 }
 0x253   :  { %546 = vst [vmem:[#allocation8 + $0xa8] sm:$0xff] %v333_v54  ;;  %548 = vst [vmem:[#allocation8 + $0xb8] sm:$0xff] %v394_v55  ;;  %v335_v56 = vpop.f32.mrb[7].mxu0  ;;  %v396_v57 = vpop.f32.mrb[7].mxu1 }
 0x254   :  { %547 = vst [vmem:[#allocation8 + $0xb0] sm:$0xff] %v335_v56  ;;  %549 = vst [vmem:[#allocation8 + $0xc0] sm:$0xff] %v396_v57 }
 0x258   :  { %v339_v58 = vpop.f32.mrb[8].mxu0  ;;  %v400_v59 = vpop.f32.mrb[8].mxu1 }
 0x259   :  { %553 = vst [vmem:[#allocation8 + $0xe0] sm:$0xff] %v339_v58  ;;  %555 = vst [vmem:[#allocation8 + $0xf0] sm:$0xff] %v400_v59  ;;  %v341_v60 = vpop.f32.mrb[9].mxu0  ;;  %v402_v61 = vpop.f32.mrb[9].mxu1 }
 0x25a   :  { %554 = vst [vmem:[#allocation8 + $0xe8] sm:$0xff] %v341_v60  ;;  %556 = vst [vmem:[#allocation8 + $0xf8] sm:$0xff] %v402_v61  ;;  %v343_v62 = vpop.f32.mrb[10].mxu0  ;;  %v404_v63 = vpop.f32.mrb[10].mxu1 }
 0x25b   :  { %v344_v0 = vpop.f32.mrb[11].mxu0  ;;  %v405_v1 = vpop.f32.mrb[11].mxu1 }
 0x260   :  { %v441_v2 = vpop.f32.mrb[12].mxu0  ;;  %v502_v3 = vpop.f32.mrb[12].mxu1 }
 0x261   :  { %528 = vst [vmem:[#allocation8 + $0x20] sm:$0xff] %v441_v2  ;;  %531 = vst.msk [vmem:[#allocation8 + $0x30] sm:$0xff] %vm530_vm3, %v502_v3  ;;  %v443_v4 = vpop.f32.mrb[13].mxu0  ;;  %v614_v5 = vpop.f32.mrb[13].mxu1 }
 0x262   :  { %529 = vst [vmem:[#allocation8 + $0x28] sm:$0xff] %v443_v4  ;;  %v445_v6 = vpop.f32.mrb[14].mxu0  ;;  %v505_v7 = vpop.f32.mrb[14].mxu1 }
 0x263   :  { %536 = vst [vmem:[#allocation8 + $0x58] sm:$0xff] %v445_v6  ;;  %538 = vst.msk [vmem:[#allocation8 + $0x68] sm:$0xff] %vm530_vm3, %v505_v7  ;;  %v447_v8 = vpop.f32.mrb[15].mxu0  ;;  %v615_v9 = vpop.f32.mrb[15].mxu1 }
 0x264   :  { %537 = vst [vmem:[#allocation8 + $0x60] sm:$0xff] %v447_v8 }
 0x268   :  { %v451_v11 = vpop.f32.mrb[16].mxu0  ;;  %v510_v12 = vpop.f32.mrb[16].mxu1 }
 0x269   :  { %543 = vst [vmem:[#allocation8 + $0x90] sm:$0xff] %v451_v11  ;;  %545 = vst.msk [vmem:[#allocation8 + $0xa0] sm:$0xff] %vm530_vm3, %v510_v12  ;;  %v453_v13 = vpop.f32.mrb[17].mxu0  ;;  %v618_v14 = vpop.f32.mrb[17].mxu1 }
 0x26a   :  { %544 = vst [vmem:[#allocation8 + $0x98] sm:$0xff] %v453_v13  ;;  %v455_v15 = vpop.f32.mrb[18].mxu0  ;;  %v513_v16 = vpop.f32.mrb[18].mxu1 }
 0x26b   :  { %550 = vst [vmem:[#allocation8 + $0xc8] sm:$0xff] %v455_v15  ;;  %552 = vst.msk [vmem:[#allocation8 + $0xd8] sm:$0xff] %vm530_vm3, %v513_v16  ;;  %v457_v17 = vpop.f32.mrb[19].mxu0  ;;  %v619_v18 = vpop.f32.mrb[19].mxu1 }
 0x26c   :  { %551 = vst [vmem:[#allocation8 + $0xd0] sm:$0xff] %v457_v17 }
 0x270   :  { %v461_v19 = vpop.f32.mrb[20].mxu0  ;;  %v518_v20 = vpop.f32.mrb[20].mxu1 }
 0x271   :  { %557 = vst [vmem:[#allocation8 + $0x100] sm:$0xff] %v461_v19  ;;  %559 = vst.msk [vmem:[#allocation8 + $0x110] sm:$0xff] %vm530_vm3, %v518_v20  ;;  %v463_v22 = vpop.f32.mrb[21].mxu0  ;;  %v622_v23 = vpop.f32.mrb[21].mxu1 }
 0x272   :  { %558 = vst [vmem:[#allocation8 + $0x108] sm:$0xff] %v463_v22  ;;  %v465_v24 = vpop.f32.mrb[22].mxu0  ;;  %v521_v25 = vpop.f32.mrb[22].mxu1 }
 0x273   :  { %v466_v26 = vpop.f32.mrb[23].mxu0  ;;  %v623_v27 = vpop.f32.mrb[23].mxu1 }
 0x274   :  { %714 = shalt.err (!%p711_p0)
}
 0x275   :  { %s715_s15 = scalar_lea.hbm %s942_s7, 4480 }
 0x276   :  { %p716_p1 = scmp.ne.s32.totalorder %s942_s7, %s715_s15  ;;  %p719_p2 = scmp.lt.u32.totalorder %s715_s15, %s942_s7 }
 0x278   :  { %p721_p3 = pnand %p719_p2, %p716_p1 }
 0x27a   :  { %724 = shalt.err (!%p721_p3)
}
 0x27b   :  { %571 = dma.vmem_to_hbm [thread:$0]  %s566_s9, 4480, %s942_s7, [#allocation4], %s736_s1, %s736_s1, %s737_s27  }
 0x27c   :  { %729 = dma.done.wait [#allocation4], 4480  }
 0x27d   :  { %730 = vsyncadd [#allocation4], 4294962816 }
 0x27e   :  { %575 = vsyncpa [#allocation3], 1 }
 0x27f   :  { %576 = vsyncpa [#allocation6], 1 }
 0x280   :  { %577 = vsyncpa [#allocation4], 1 }

</bundles_post_ra>
